<compile_context>
chip_gen: v6e
topology: v6e:2x2x1
jax: 0.10.0
libtpu: 0.0.40
codegen_flags: <defaults>
</compile_context>

<pallas_src>
import functools

import jax
import jax.numpy as jnp
from jax import lax
from jax.experimental import pallas as pl
from jax.experimental.pallas import tpu as pltpu


def _edge_update_kernel(node_ref, edge_ref, w_ref, b_ref, wout_ref, bout_ref,
                        out_ref, sim_ref, *, N, D, TB, G, n_layers, Cmax):
    """One grid step = TB graphs. sim_ref: VMEM (TB, N, N) f32 scratch."""
    M = G * N * N                                   # pair rows per MLP chunk

    # ---- hoisted, loop-invariant parameter loads -----------------------------
    wout = wout_ref[...]                            # (1, Cmax) f32
    bout = bout_ref[0, 0]                           # SMEM scalar
    ws, bs = [], []
    for li in range(n_layers):
        kin = D if li == 0 else Cmax
        ws.append(w_ref[li] if kin == Cmax else w_ref[li, :kin, :])   # bf16/f32
        bs.append(b_ref[li])                        # (1, Cmax) f32

    # ---- sim_network on a chunk of G whole graphs ----------------------------
    def mlp_chunk(g0):
        xg = node_ref[pl.ds(g0, G)].astype(jnp.float32)          # (G, N, D)
        xij = jnp.abs(xg[:, :, None, :] - xg[:, None, :, :])     # (G, N, N, D)
        h = xij.reshape(M, D)                                    # minor dim D kept
        for li in range(n_layers):
            # bf16 MXU operands, f32 accumulation; bias + LeakyReLU stay f32.
            acc = jnp.dot(h.astype(ws[li].dtype), ws[li],
                          preferred_element_type=jnp.float32) + bs[li]
            h = jnp.maximum(acc, 0.01 * acc)                     # LeakyReLU(0.01)
        # conv_out (Cmax -> 1) as a lane reduction, relaid out so N is the
        # lane dim before the sigmoid (lane-dense EUP work downstream).
        logit = jnp.sum((h * wout).reshape(G, N, N, Cmax), axis=-1) + bout
        sim_ref[pl.ds(g0, G)] = pl.reciprocal(1.0 + jnp.exp(-logit), approx=True)

    n_chunks = TB // G
    if n_chunks == 1:
        mlp_chunk(0)
    else:
        def body(c, carry):
            mlp_chunk(pl.multiple_of(c * G, G))
            return carry
        lax.fori_loop(0, n_chunks, body, 0, unroll=False)

    # ---- edge update, channel-first (TB, 2, N, N); N in lanes ---------------
    sim = sim_ref[...][:, None, :, :]                            # (TB, 1, N, N)
    e = edge_ref[...].astype(jnp.float32)                        # (TB, 2, N, N)
    row = lax.broadcasted_iota(jnp.int32, (1, 1, N, N), 2)
    col = lax.broadcasted_iota(jnp.int32, (1, 1, N, N), 3)
    eye = (row == col).astype(jnp.float32)                       # (1, 1, N, N)
    ch0 = lax.broadcasted_iota(jnp.int32, (1, 2, 1, 1), 1) == 0  # channel-0 mask

    e = e * (1.0 - eye)                                          # zero the diagonal
    merge_sum = jnp.sum(e, axis=-1, keepdims=True)               # (TB, 2, N, 1) lane reduce
    prod = jnp.where(ch0, sim, 1.0 - sim) * e                    # [sim, 1-sim] * e
    l1 = jnp.maximum(jnp.sum(jnp.abs(prod), axis=-1, keepdims=True), 1e-12)
    ef = prod * (pl.reciprocal(l1, approx=True) * merge_sum)     # F.normalize(p=1)*merge_sum
    ef = ef + jnp.where(ch0, eye, 0.0) + 1e-6                    # force diag + eps
    denom = ef[:, 0:1, :, :] + ef[:, 1:2, :, :]                  # 2-channel sum (slab add)
    out_ref[...] = (ef * pl.reciprocal(denom, approx=True)).astype(out_ref.dtype)


def _vmem_budget_bytes():
    """Per-grid-step live-block budget, sized per TPU generation."""
    try:
        cap = getattr(pltpu.get_tpu_info(), "vmem_capacity_bytes", None)
    except Exception:
        cap = None
    if cap is None:
        cap = 64 << 20
    # Stay well inside the scoped-VMEM limit we request (32 MiB); tighter on
    # small-VMEM parts (v7x: 64 MiB per TensorCore).
    return (6 << 20) if cap <= (64 << 20) else (10 << 20)


def edge_update_forward(node_feat, edge_feat, layer_params, out_w, out_b,
                        *, bn_eps=1e-5, tb=None, mxu_bf16=True):
    """node_feat: (B, N, D); edge_feat: (B, 2, N, N) channel-first.

    layer_params: list of (W, gamma, beta, running_mean, running_var) for each
    1x1-conv(no bias) + BatchNorm2d(eval) + LeakyReLU block, W: (out, in).
    out_w: (1, C_last) conv_out weight; out_b: (1,) conv_out bias.
    Returns (B, 2, N, N), matching EdgeUpdateNetwork.forward.
    """
    B, N, D = node_feat.shape
    assert edge_feat.shape == (B, 2, N, N)
    n_layers = len(layer_params)
    out_channels = [lp[0].shape[0] for lp in layer_params]
    Cmax = max([D] + out_channels)

    # Fold eval-mode BatchNorm into the bias-free 1x1 convs, pad to Cmax and
    # stack so the kernel takes 2 parameter arrays instead of 2*n_layers.
    w_stack = jnp.zeros((n_layers, Cmax, Cmax), jnp.float32)
    b_stack = jnp.zeros((n_layers, 1, Cmax), jnp.float32)
    for li, (W, gamma, beta, mean, var) in enumerate(layer_params):
        scale = gamma / jnp.sqrt(var + bn_eps)
        Wf = (W * scale[:, None]).T.astype(jnp.float32)          # (in, out)
        bf = (beta - mean * scale).astype(jnp.float32)           # (out,)
        kin, kout = Wf.shape
        w_stack = w_stack.at[li, :kin, :kout].set(Wf)
        b_stack = b_stack.at[li, 0, :kout].set(bf)
    w_stack = w_stack.astype(jnp.bfloat16 if mxu_bf16 else jnp.float32)
    wout_row = jnp.zeros((1, Cmax), jnp.float32)
    wout_row = wout_row.at[0, :out_w.shape[1]].set(out_w.reshape(-1).astype(jnp.float32))
    bout = out_b.reshape(1, 1).astype(jnp.float32)               # SMEM scalar

    # Batch tile (tb) from a generation-aware VMEM budget: in/out blocks are
    # double-buffered, edge-math temporaries ~12 (N,N) slabs per graph; the MLP
    # chunk is sized separately and does not scale with tb. tb must divide B
    # (no host-side pad copies); prefer an even number of grid steps (v7x 2 TC).
    budget = _vmem_budget_bytes()
    per_graph = 4 * (2 * (N * D + 4 * N * N) + 12 * N * N)
    if tb is None:
        tb_cap = max(1, min(B, budget // max(per_graph, 1)))
        divisors = [t for t in range(tb_cap, 0, -1) if B % t == 0]
        tb = next((t for t in divisors if (B // t) % 2 == 0), divisors[0])
    assert B % tb == 0, "tb must divide B"
    num_tiles = B // tb

    # In-kernel MLP chunk: G whole graphs per inner step (~1024 pair rows).
    G = max(1, min(tb, 1024 // max(N * N, 1)))
    while tb % G:
        G -= 1

    kernel = functools.partial(_edge_update_kernel, N=N, D=D, TB=tb, G=G,
                               n_layers=n_layers, Cmax=Cmax)
    return pl.pallas_call(
        kernel,
        out_shape=jax.ShapeDtypeStruct((B, 2, N, N), edge_feat.dtype),
        grid=(num_tiles,),
        in_specs=[
            pl.BlockSpec((tb, N, D), lambda i: (i, 0, 0)),
            pl.BlockSpec((tb, 2, N, N), lambda i: (i, 0, 0, 0)),
            pl.BlockSpec(w_stack.shape, lambda i: (0, 0, 0)),
            pl.BlockSpec(b_stack.shape, lambda i: (0, 0, 0)),
            pl.BlockSpec(wout_row.shape, lambda i: (0, 0)),
            pl.BlockSpec(memory_space=pltpu.MemorySpace.SMEM),
        ],
        out_specs=pl.BlockSpec((tb, 2, N, N), lambda i: (i, 0, 0, 0)),
        scratch_shapes=[pltpu.VMEM((tb, N, N), jnp.float32)],
        compiler_params=pltpu.CompilerParams(
            dimension_semantics=("parallel",),
            vmem_limit_bytes=32 << 20),
    )(node_feat, edge_feat, w_stack, b_stack, wout_row, bout)


def _reference(node_feat, edge_feat, layer_params, out_w, out_b, bn_eps=1e-5):
    """Pure-JAX f32 mirror of EdgeUpdateNetwork.forward (eval BN, no dropout)."""
    B, N, D = node_feat.shape
    x_i = node_feat[:, :, None, :]
    x_j = node_feat[:, None, :, :]
    h = jnp.abs(x_i - x_j)                                        # (B, N, N, D)
    for (W, gamma, beta, mean, var) in layer_params:
        h = jnp.einsum('bijd,od->bijo', h, W)
        h = (h - mean) / jnp.sqrt(var + bn_eps) * gamma + beta
        h = jnp.where(h > 0, h, 0.01 * h)
    logit = jnp.einsum('bijd,od->bijo', h, out_w) + out_b         # (B, N, N, 1)
    sim = jnp.transpose(jax.nn.sigmoid(logit), (0, 3, 1, 2))      # (B, 1, N, N)

    eye = jnp.eye(N, dtype=edge_feat.dtype)
    e = edge_feat * (1.0 - eye)[None, None]
    merge_sum = jnp.sum(e, axis=-1, keepdims=True)
    wch = jnp.concatenate([sim, 1.0 - sim], axis=1)
    prod = wch * e
    l1 = jnp.maximum(jnp.sum(jnp.abs(prod), axis=-1, keepdims=True), 1e-12)
    ef = prod / l1 * merge_sum
    force = jnp.concatenate([eye[None], jnp.zeros((1, N, N), edge_feat.dtype)], 0)[None]
    ef = ef + force + 1e-6
    return ef / jnp.sum(ef, axis=1, keepdims=True)


if __name__ == "__main__":
    B, N = 2, 8
    D = 32                       # in_features
    num_features = 16
    ratio = [2, 2, 1, 1]
    chans = [num_features * r for r in ratio]                     # [32, 32, 16, 16]

    key = jax.random.PRNGKey(0)
    keys = iter(jax.random.split(key, 4 * 5 + 4))

    layer_params = []
    in_c = D
    for out_c in chans:
        W = jax.random.normal(next(keys), (out_c, in_c), jnp.float32) / jnp.sqrt(in_c)
        gamma = 1.0 + 0.1 * jax.random.normal(next(keys), (out_c,), jnp.float32)
        beta = 0.1 * jax.random.normal(next(keys), (out_c,), jnp.float32)
        mean = 0.1 * jax.random.normal(next(keys), (out_c,), jnp.float32)
        var = jax.random.uniform(next(keys), (out_c,), jnp.float32, 0.5, 1.5)
        layer_params.append((W, gamma, beta, mean, var))
        in_c = out_c

    out_w = jax.random.normal(next(keys), (1, chans[-1]), jnp.float32) / jnp.sqrt(chans[-1])
    out_b = 0.1 * jax.random.normal(next(keys), (1,), jnp.float32)

    node_feat = jax.random.normal(next(keys), (B, N, D), jnp.float32)
    edge_feat = jax.random.uniform(next(keys), (B, 2, N, N), jnp.float32)

    out = edge_update_forward(node_feat, edge_feat, layer_params, out_w, out_b)
    out = jax.block_until_ready(out)

    ref = _reference(node_feat, edge_feat, layer_params, out_w, out_b)
    assert out.shape == (B, 2, N, N)
    # Tolerance covers the deliberate precision choices (bf16 MXU operands with
    # f32 accumulation, EUP approximate reciprocals); any logic bug in the
    # folding / edge normalization produces O(1e-1) errors.
    err = jnp.max(jnp.abs(out - ref))
    assert jnp.allclose(out, ref, rtol=3e-2, atol=2e-3), f"max abs err {err}"
    print("KERNEL_OK")
</pallas_src>

<mosaic_0001>
module attributes {stable_mosaic.version = 11 : i64} {
  func.func @_edge_update_kernel(%arg0: i32, %arg1: memref<1x8x32xf32, #tpu.memory_space<vmem>>, %arg2: memref<1x2x8x8xf32, #tpu.memory_space<vmem>>, %arg3: memref<4x32x32xbf16, #tpu.memory_space<vmem>>, %arg4: memref<4x1x32xf32, #tpu.memory_space<vmem>>, %arg5: memref<1x32xf32, #tpu.memory_space<vmem>>, %arg6: memref<1x1xf32, #tpu.memory_space<smem>>, %arg7: memref<1x2x8x8xf32, #tpu.memory_space<vmem>>, %arg8: memref<1x8x8xf32, #tpu.memory_space<vmem>>) attributes {dimension_semantics = [#tpu.dimension_semantics<parallel>], iteration_bounds = array<i64: 2>, scalar_prefetch = 0 : i64, scratch_operands = 1 : i64, tpu.core_type = #tpu.core_type<tc>, window_params = [{transform_indices = @transform_0, window_bounds = array<i64: 1, 8, 32>}, {transform_indices = @transform_1, window_bounds = array<i64: 1, 2, 8, 8>}, {pipeline_mode = #tpu.pipeline_mode<synchronous>, transform_indices = @transform_2, window_bounds = array<i64: 4, 32, 32>}, {pipeline_mode = #tpu.pipeline_mode<synchronous>, transform_indices = @transform_3, window_bounds = array<i64: 4, 1, 32>}, {pipeline_mode = #tpu.pipeline_mode<synchronous>, transform_indices = @transform_4, window_bounds = array<i64: 1, 32>}, {transform_indices = @transform_5, window_bounds = array<i64: 1, 1>}, {transform_indices = @transform_6, window_bounds = array<i64: 1, 2, 8, 8>}]} {
    %c0 = arith.constant 0 : index
    %c0_0 = arith.constant 0 : index
    %0 = vector.load %arg5[%c0, %c0_0] : memref<1x32xf32, #tpu.memory_space<vmem>>, vector<1x32xf32>
    %c0_1 = arith.constant 0 : index
    %c0_2 = arith.constant 0 : index
    %1 = memref.load %arg6[%c0_1, %c0_2] : memref<1x1xf32, #tpu.memory_space<smem>>
    %c0_3 = arith.constant 0 : index
    %c0_4 = arith.constant 0 : index
    %c0_5 = arith.constant 0 : index
    %2 = vector.load %arg3[%c0_3, %c0_4, %c0_5] : memref<4x32x32xbf16, #tpu.memory_space<vmem>>, vector<1x32x32xbf16>
    %3 = vector.shape_cast %2 : vector<1x32x32xbf16> to vector<32x32xbf16>
    %c0_6 = arith.constant 0 : index
    %c0_7 = arith.constant 0 : index
    %c0_8 = arith.constant 0 : index
    %4 = vector.load %arg4[%c0_6, %c0_7, %c0_8] : memref<4x1x32xf32, #tpu.memory_space<vmem>>, vector<1x1x32xf32>
    %5 = vector.shape_cast %4 : vector<1x1x32xf32> to vector<1x32xf32>
    %c1 = arith.constant 1 : index
    %c0_9 = arith.constant 0 : index
    %c0_10 = arith.constant 0 : index
    %6 = vector.load %arg3[%c1, %c0_9, %c0_10] : memref<4x32x32xbf16, #tpu.memory_space<vmem>>, vector<1x32x32xbf16>
    %7 = vector.shape_cast %6 : vector<1x32x32xbf16> to vector<32x32xbf16>
    %c1_11 = arith.constant 1 : index
    %c0_12 = arith.constant 0 : index
    %c0_13 = arith.constant 0 : index
    %8 = vector.load %arg4[%c1_11, %c0_12, %c0_13] : memref<4x1x32xf32, #tpu.memory_space<vmem>>, vector<1x1x32xf32>
    %9 = vector.shape_cast %8 : vector<1x1x32xf32> to vector<1x32xf32>
    %c2 = arith.constant 2 : index
    %c0_14 = arith.constant 0 : index
    %c0_15 = arith.constant 0 : index
    %10 = vector.load %arg3[%c2, %c0_14, %c0_15] : memref<4x32x32xbf16, #tpu.memory_space<vmem>>, vector<1x32x32xbf16>
    %11 = vector.shape_cast %10 : vector<1x32x32xbf16> to vector<32x32xbf16>
    %c2_16 = arith.constant 2 : index
    %c0_17 = arith.constant 0 : index
    %c0_18 = arith.constant 0 : index
    %12 = vector.load %arg4[%c2_16, %c0_17, %c0_18] : memref<4x1x32xf32, #tpu.memory_space<vmem>>, vector<1x1x32xf32>
    %13 = vector.shape_cast %12 : vector<1x1x32xf32> to vector<1x32xf32>
    %c3 = arith.constant 3 : index
    %c0_19 = arith.constant 0 : index
    %c0_20 = arith.constant 0 : index
    %14 = vector.load %arg3[%c3, %c0_19, %c0_20] : memref<4x32x32xbf16, #tpu.memory_space<vmem>>, vector<1x32x32xbf16>
    %15 = vector.shape_cast %14 : vector<1x32x32xbf16> to vector<32x32xbf16>
    %c3_21 = arith.constant 3 : index
    %c0_22 = arith.constant 0 : index
    %c0_23 = arith.constant 0 : index
    %16 = vector.load %arg4[%c3_21, %c0_22, %c0_23] : memref<4x1x32xf32, #tpu.memory_space<vmem>>, vector<1x1x32xf32>
    %17 = vector.shape_cast %16 : vector<1x1x32xf32> to vector<1x32xf32>
    %c0_24 = arith.constant 0 : index
    %c0_25 = arith.constant 0 : index
    %c0_26 = arith.constant 0 : index
    %18 = vector.load %arg1[%c0_24, %c0_25, %c0_26] : memref<1x8x32xf32, #tpu.memory_space<vmem>>, vector<1x8x32xf32>
    %19 = vector.shape_cast %18 : vector<1x8x32xf32> to vector<1x8x1x32xf32>
    %20 = vector.shape_cast %18 : vector<1x8x32xf32> to vector<1x1x8x32xf32>
    %21 = vector.broadcast %19 : vector<1x8x1x32xf32> to vector<1x8x8x32xf32>
    %22 = vector.broadcast %20 : vector<1x1x8x32xf32> to vector<1x8x8x32xf32>
    %23 = arith.subf %21, %22 : vector<1x8x8x32xf32>
    %24 = math.absf %23 : vector<1x8x8x32xf32>
    %25 = vector.shape_cast %24 : vector<1x8x8x32xf32> to vector<64x32xf32>
    %26 = arith.truncf %25 : vector<64x32xf32> to vector<64x32xbf16>
    %cst = arith.constant dense<0.000000e+00> : vector<64x32xf32>
    %27 = tpu.matmul %26, %3, %cst {dimension_numbers = #tpu.dot_dimension_numbers<[1], [0], [0], [1], [0, 0, 1, 1], [], []>} : vector<64x32xbf16>, vector<32x32xbf16>, vector<64x32xf32> -> vector<64x32xf32>
    %28 = vector.broadcast %5 : vector<1x32xf32> to vector<64x32xf32>
    %29 = arith.addf %27, %28 : vector<64x32xf32>
    %cst_27 = arith.constant 0.00999999977 : f32
    %30 = vector.broadcast %cst_27 : f32 to vector<64x32xf32>
    %31 = arith.mulf %30, %29 : vector<64x32xf32>
    %32 = arith.maximumf %29, %31 : vector<64x32xf32>
    %33 = arith.truncf %32 : vector<64x32xf32> to vector<64x32xbf16>
    %cst_28 = arith.constant dense<0.000000e+00> : vector<64x32xf32>
    %34 = tpu.matmul %33, %7, %cst_28 {dimension_numbers = #tpu.dot_dimension_numbers<[1], [0], [0], [1], [0, 0, 1, 1], [], []>} : vector<64x32xbf16>, vector<32x32xbf16>, vector<64x32xf32> -> vector<64x32xf32>
    %35 = vector.broadcast %9 : vector<1x32xf32> to vector<64x32xf32>
    %36 = arith.addf %34, %35 : vector<64x32xf32>
    %cst_29 = arith.constant 0.00999999977 : f32
    %37 = vector.broadcast %cst_29 : f32 to vector<64x32xf32>
    %38 = arith.mulf %37, %36 : vector<64x32xf32>
    %39 = arith.maximumf %36, %38 : vector<64x32xf32>
    %40 = arith.truncf %39 : vector<64x32xf32> to vector<64x32xbf16>
    %cst_30 = arith.constant dense<0.000000e+00> : vector<64x32xf32>
    %41 = tpu.matmul %40, %11, %cst_30 {dimension_numbers = #tpu.dot_dimension_numbers<[1], [0], [0], [1], [0, 0, 1, 1], [], []>} : vector<64x32xbf16>, vector<32x32xbf16>, vector<64x32xf32> -> vector<64x32xf32>
    %42 = vector.broadcast %13 : vector<1x32xf32> to vector<64x32xf32>
    %43 = arith.addf %41, %42 : vector<64x32xf32>
    %cst_31 = arith.constant 0.00999999977 : f32
    %44 = vector.broadcast %cst_31 : f32 to vector<64x32xf32>
    %45 = arith.mulf %44, %43 : vector<64x32xf32>
    %46 = arith.maximumf %43, %45 : vector<64x32xf32>
    %47 = arith.truncf %46 : vector<64x32xf32> to vector<64x32xbf16>
    %cst_32 = arith.constant dense<0.000000e+00> : vector<64x32xf32>
    %48 = tpu.matmul %47, %15, %cst_32 {dimension_numbers = #tpu.dot_dimension_numbers<[1], [0], [0], [1], [0, 0, 1, 1], [], []>} : vector<64x32xbf16>, vector<32x32xbf16>, vector<64x32xf32> -> vector<64x32xf32>
    %49 = vector.broadcast %17 : vector<1x32xf32> to vector<64x32xf32>
    %50 = arith.addf %48, %49 : vector<64x32xf32>
    %cst_33 = arith.constant 0.00999999977 : f32
    %51 = vector.broadcast %cst_33 : f32 to vector<64x32xf32>
    %52 = arith.mulf %51, %50 : vector<64x32xf32>
    %53 = arith.maximumf %50, %52 : vector<64x32xf32>
    %54 = vector.broadcast %0 : vector<1x32xf32> to vector<64x32xf32>
    %55 = arith.mulf %53, %54 : vector<64x32xf32>
    %56 = vector.shape_cast %55 : vector<64x32xf32> to vector<1x8x8x32xf32>
    %cst_34 = arith.constant dense<0.000000e+00> : vector<1x8x8xf32>
    %57 = vector.multi_reduction <add>, %56, %cst_34 [3] : vector<1x8x8x32xf32> to vector<1x8x8xf32>
    %58 = vector.broadcast %1 : f32 to vector<1x8x8xf32>
    %59 = arith.addf %57, %58 : vector<1x8x8xf32>
    %cst_35 = arith.constant 0.000000e+00 : f32
    %60 = vector.broadcast %cst_35 : f32 to vector<1x8x8xf32>
    %61 = arith.subf %60, %59 : vector<1x8x8xf32>
    %62 = math.exp %61 : vector<1x8x8xf32>
    %cst_36 = arith.constant 1.000000e+00 : f32
    %63 = vector.broadcast %cst_36 : f32 to vector<1x8x8xf32>
    %64 = arith.addf %63, %62 : vector<1x8x8xf32>
    %65 = tpu.reciprocal %64 {approx = true} : vector<1x8x8xf32> -> vector<1x8x8xf32>
    %c0_37 = arith.constant 0 : index
    %c0_38 = arith.constant 0 : index
    %c0_39 = arith.constant 0 : index
    %66 = vector.load %arg8[%c0_37, %c0_38, %c0_39] : memref<1x8x8xf32, #tpu.memory_space<vmem>>, vector<1x8x8xf32>
    tpu.vector_store %arg8[%c0_37, %c0_38, %c0_39], %65 {strides = array<i32>} : memref<1x8x8xf32, #tpu.memory_space<vmem>>, vector<1x8x8xf32>,
    %c0_40 = arith.constant 0 : index
    %c0_41 = arith.constant 0 : index
    %c0_42 = arith.constant 0 : index
    %67 = vector.load %arg8[%c0_40, %c0_41, %c0_42] : memref<1x8x8xf32, #tpu.memory_space<vmem>>, vector<1x8x8xf32>
    %68 = vector.shape_cast %67 : vector<1x8x8xf32> to vector<1x1x8x8xf32>
    %c0_43 = arith.constant 0 : index
    %c0_44 = arith.constant 0 : index
    %c0_45 = arith.constant 0 : index
    %c0_46 = arith.constant 0 : index
    %69 = vector.load %arg2[%c0_43, %c0_44, %c0_45, %c0_46] : memref<1x2x8x8xf32, #tpu.memory_space<vmem>>, vector<1x2x8x8xf32>
    %70 = tpu.iota {dimensions = array<i32: 2>} : vector<1x1x8x8xi32>
    %71 = tpu.iota {dimensions = array<i32: 3>} : vector<1x1x8x8xi32>
    %72 = arith.cmpi eq, %70, %71 : vector<1x1x8x8xi32>
    %73 = arith.extui %72 : vector<1x1x8x8xi1> to vector<1x1x8x8xi32>
    %74 = arith.sitofp %73 : vector<1x1x8x8xi32> to vector<1x1x8x8xf32>
    %75 = tpu.iota {dimensions = array<i32: 1>} : vector<1x2x1x1xi32>
    %c0_i32 = arith.constant 0 : i32
    %76 = vector.broadcast %c0_i32 : i32 to vector<1x2x1x1xi32>
    %77 = arith.cmpi eq, %75, %76 : vector<1x2x1x1xi32>
    %cst_47 = arith.constant 1.000000e+00 : f32
    %78 = vector.broadcast %cst_47 : f32 to vector<1x1x8x8xf32>
    %79 = arith.subf %78, %74 : vector<1x1x8x8xf32>
    %80 = vector.broadcast %79 : vector<1x1x8x8xf32> to vector<1x2x8x8xf32>
    %81 = arith.mulf %69, %80 : vector<1x2x8x8xf32>
    %cst_48 = arith.constant dense<0.000000e+00> : vector<1x2x8xf32>
    %82 = vector.multi_reduction <add>, %81, %cst_48 [3] : vector<1x2x8x8xf32> to vector<1x2x8xf32>
    %83 = vector.shape_cast %82 : vector<1x2x8xf32> to vector<1x2x8x1xf32>
    %cst_49 = arith.constant 1.000000e+00 : f32
    %84 = vector.broadcast %cst_49 : f32 to vector<1x1x8x8xf32>
    %85 = arith.subf %84, %68 : vector<1x1x8x8xf32>
    %86 = vector.shape_cast %77 : vector<1x2x1x1xi1> to vector<1x2x1x1xi1>
    %87 = vector.broadcast %86 : vector<1x2x1x1xi1> to vector<1x2x8x8xi1>
    %88 = vector.shape_cast %68 : vector<1x1x8x8xf32> to vector<1x1x8x8xf32>
    %89 = vector.broadcast %88 : vector<1x1x8x8xf32> to vector<1x2x8x8xf32>
    %90 = vector.shape_cast %85 : vector<1x1x8x8xf32> to vector<1x1x8x8xf32>
    %91 = vector.broadcast %90 : vector<1x1x8x8xf32> to vector<1x2x8x8xf32>
    %92 = arith.select %87, %89, %91 : vector<1x2x8x8xi1>, vector<1x2x8x8xf32>
    %93 = arith.mulf %92, %81 : vector<1x2x8x8xf32>
    %94 = math.absf %93 : vector<1x2x8x8xf32>
    %cst_50 = arith.constant dense<0.000000e+00> : vector<1x2x8xf32>
    %95 = vector.multi_reduction <add>, %94, %cst_50 [3] : vector<1x2x8x8xf32> to vector<1x2x8xf32>
    %96 = vector.shape_cast %95 : vector<1x2x8xf32> to vector<1x2x8x1xf32>
    %cst_51 = arith.constant 9.99999996E-13 : f32
    %97 = vector.broadcast %cst_51 : f32 to vector<1x2x8x1xf32>
    %98 = arith.maximumf %96, %97 : vector<1x2x8x1xf32>
    %99 = tpu.reciprocal %98 {approx = true} : vector<1x2x8x1xf32> -> vector<1x2x8x1xf32>
    %100 = arith.mulf %99, %83 : vector<1x2x8x1xf32>
    %101 = vector.broadcast %100 : vector<1x2x8x1xf32> to vector<1x2x8x8xf32>
    %102 = arith.mulf %93, %101 : vector<1x2x8x8xf32>
    %cst_52 = arith.constant 0.000000e+00 : f32
    %103 = vector.shape_cast %77 : vector<1x2x1x1xi1> to vector<1x2x1x1xi1>
    %104 = vector.broadcast %103 : vector<1x2x1x1xi1> to vector<1x2x8x8xi1>
    %105 = vector.shape_cast %74 : vector<1x1x8x8xf32> to vector<1x1x8x8xf32>
    %106 = vector.broadcast %105 : vector<1x1x8x8xf32> to vector<1x2x8x8xf32>
    %107 = vector.broadcast %cst_52 : f32 to vector<1x2x8x8xf32>
    %108 = arith.select %104, %106, %107 : vector<1x2x8x8xi1>, vector<1x2x8x8xf32>
    %109 = arith.addf %102, %108 : vector<1x2x8x8xf32>
    %cst_53 = arith.constant 9.99999997E-7 : f32
    %110 = vector.broadcast %cst_53 : f32 to vector<1x2x8x8xf32>
    %111 = arith.addf %109, %110 : vector<1x2x8x8xf32>
    %112 = vector.extract_strided_slice %111 {offsets = [0, 0, 0, 0], sizes = [1, 1, 8, 8], strides = [1, 1, 1, 1]} : vector<1x2x8x8xf32> to vector<1x1x8x8xf32>
    %113 = vector.extract_strided_slice %111 {offsets = [0, 1, 0, 0], sizes = [1, 1, 8, 8], strides = [1, 1, 1, 1]} : vector<1x2x8x8xf32> to vector<1x1x8x8xf32>
    %114 = arith.addf %112, %113 : vector<1x1x8x8xf32>
    %115 = tpu.reciprocal %114 {approx = true} : vector<1x1x8x8xf32> -> vector<1x1x8x8xf32>
    %116 = vector.broadcast %115 : vector<1x1x8x8xf32> to vector<1x2x8x8xf32>
    %117 = arith.mulf %111, %116 : vector<1x2x8x8xf32>
    %c0_54 = arith.constant 0 : index
    %c0_55 = arith.constant 0 : index
    %c0_56 = arith.constant 0 : index
    %c0_57 = arith.constant 0 : index
    %118 = vector.load %arg7[%c0_54, %c0_55, %c0_56, %c0_57] : memref<1x2x8x8xf32, #tpu.memory_space<vmem>>, vector<1x2x8x8xf32>
    tpu.vector_store %arg7[%c0_54, %c0_55, %c0_56, %c0_57], %117 {strides = array<i32>} : memref<1x2x8x8xf32, #tpu.memory_space<vmem>>, vector<1x2x8x8xf32>,
    return
  }
  func.func @transform_0(%arg0: i32) -> (i32, i32, i32) {
    %c0_i32 = arith.constant 0 : i32
    %c0_i32_0 = arith.constant 0 : i32
    %c0_i32_1 = arith.constant 0 : i32
    return %arg0, %c0_i32, %c0_i32_0 : i32, i32, i32
  }
  func.func @transform_1(%arg0: i32) -> (i32, i32, i32, i32) {
    %c0_i32 = arith.constant 0 : i32
    %c0_i32_0 = arith.constant 0 : i32
    %c0_i32_1 = arith.constant 0 : i32
    %c0_i32_2 = arith.constant 0 : i32
    return %arg0, %c0_i32, %c0_i32_0, %c0_i32_1 : i32, i32, i32, i32
  }
  func.func @transform_2(%arg0: i32) -> (i32, i32, i32) {
    %c0_i32 = arith.constant 0 : i32
    %c0_i32_0 = arith.constant 0 : i32
    %c0_i32_1 = arith.constant 0 : i32
    %c0_i32_2 = arith.constant 0 : i32
    return %c0_i32, %c0_i32_0, %c0_i32_1 : i32, i32, i32
  }
  func.func @transform_3(%arg0: i32) -> (i32, i32, i32) {
    %c0_i32 = arith.constant 0 : i32
    %c0_i32_0 = arith.constant 0 : i32
    %c0_i32_1 = arith.constant 0 : i32
    %c0_i32_2 = arith.constant 0 : i32
    return %c0_i32, %c0_i32_0, %c0_i32_1 : i32, i32, i32
  }
  func.func @transform_4(%arg0: i32) -> (i32, i32) {
    %c0_i32 = arith.constant 0 : i32
    %c0_i32_0 = arith.constant 0 : i32
    %c0_i32_1 = arith.constant 0 : i32
    return %c0_i32, %c0_i32_0 : i32, i32
  }
  func.func @transform_5(%arg0: i32) -> (i32, i32) {
    %c0_i32 = arith.constant 0 : i32
    %c0_i32_0 = arith.constant 0 : i32
    %c0_i32_1 = arith.constant 0 : i32
    return %c0_i32, %c0_i32_0 : i32, i32
  }
  func.func @transform_6(%arg0: i32) -> (i32, i32, i32, i32) {
    %c0_i32 = arith.constant 0 : i32
    %c0_i32_0 = arith.constant 0 : i32
    %c0_i32_1 = arith.constant 0 : i32
    %c0_i32_2 = arith.constant 0 : i32
    return %arg0, %c0_i32, %c0_i32_0, %c0_i32_1 : i32, i32, i32, i32
  }
}

</mosaic_0001>

<bundles_post_ra>
// kernel: tpu_custom_call.1
= control target key start
LH: loop header
LB: loop body
LE: loop exit
PB: predicated region body
PF: predicated region fallthrough
CT: control target
= control target key end

     0   :  { %s1964_s0 = inlined_call_operand.hbm [shape: f32[2,8,32], index: 0, kind: input, shape index: {}]   ;;  %s1965_s1 = inlined_call_operand.hbm [shape: f32[2,2,8,8], index: 1, kind: input, shape index: {}]   ;;  %s1966_s2 = inlined_call_operand.hbm [shape: bf16[4,32,32], index: 2, kind: input, shape index: {}]   ;;  %s1967_s3 = inlined_call_operand.vmem [shape: f32[4,1,32], index: 3, kind: input, shape index: {}]   ;;  %s1968_s4 = inlined_call_operand.vmem [shape: f32[1,32], index: 4, kind: input, shape index: {}]   ;;  %s1969_s5 = inlined_call_operand.<no memory space> [shape: f32[1,1], index: 5, kind: input, shape index: {}]   ;;  %s1970_s6 = inlined_call_operand.hbm [shape: f32[2,2,8,8], index: 6, kind: output, shape index: {}]  }
   0x1   :  { %11 = sst [smem:[#allocation3]] %s1969_s5 }
   0x2   :  { %12 = vsyncpa [#allocation5], 0 }
   0x3   :  { %14 = vsyncpa [#allocation5 + $0x1], 0 }
   0x4   :  { %15 = vsyncpa [#allocation8], 0 }
   0x5   :  { %17 = vsyncpa [#allocation8 + $0x1], 0 }
   0x6   :  { %18 = vsyncpa [#allocation6], 0 }
   0x7   :  { %20 = vsyncpa [#allocation6 + $0x1], 0  ;;  %s1683_s23 = smov 0   ;;  %s1685_s24 = smov 0  }
   0x8   :  { %s1687_s25 = smov 0   ;;  %s1689_s26 = smov 0  }
   0x9 LB: > { %s1704_s5 = sadd.s32 4294967295, %s1631_s26   ;;  %s1234_s27 = sadd.s32 4294967294, %s1631_s26   ;;  %s1631_s26 = sphi %s1689_s26, %s1992_s26   ;;  %s1627_s25 = sphi %s1687_s25, %s1991_s25   ;;  %s1623_s24 = sphi %s1685_s24, %s1990_s24   ;;  %s1619_s23 = sphi %s1683_s23, %s1989_s23  }
   0xa   : > { %p46_p0 = scmp.ne.s32.totalorder %s1623_s24, %s1619_s23  ;;  %p1971_p1 = scmp.eq.s32.totalorder %s1704_s5, 0 }
   0xb   : > { %p186_p3 = scmp.eq.s32.totalorder %s1234_s27, 1  ;;  %p1235_p5 = scmp.ge.s32.totalorder %s1631_s26, 1 }
   0xc   : > { %p1713_p4 = por %p1971_p1, %p46_p0  ;;  %p193_p7 = scmp.lt.s32.totalorder %s1631_s26, 3 }
   0xd   : > { %p1718_p6 = por %p186_p3, %p46_p0  ;;  %s1633_s7 = smov [#allocation9]  }
   0xe   : > { %s1975_s28 = scalar_select %p1713_p4, 1, 0 }
   0xf   : > { %s1976_s29 = scalar_select %p1718_p6, 1, 0 }
  0x10   : > { %p1723_p8 = pnand %p1235_p5, %p193_p7  ;;  %s205_s8 = sshll.u32 %s1633_s7, 4  ;;  %s206_s8 = int_to_ptr.vmem [resolvable:$true] %s205_s8 }
  0x11   : > { %s1737_s10 = sadd.s32 1, %s1631_s26   ;;  %s33_s11 = sadd.s32 1, %s1627_s25 }
  0x12   : > { %s1977_s30 = scalar_select %p1723_p8, 1, 0 }
  0x13   : > { %p1370_p9 = pneg %p1723_p8  ;;  %s30_s12 = ssub.s32 %s1631_s26, %s1737_s10 }
  0x14   : > { %s1488_s13 = scalar_lea.vmem %s206_s8, 1024  ;;  %p1496_p5 = scmp.lt.s32.totalorder %s206_s8, %s206_s8 }
  0x15   : > { %p1732_p11 = pnand %p1370_p9, %p1971_p1  ;;  %p1489_p13 = scmp.ne.s32.totalorder %s206_s8, %s1488_s13 }
  0x16   : > { %p1497_p7 = scmp.lt.s32.totalorder %s1488_s13, %s1488_s13 }
  0x17   : > { %p1479_p12 = pneg %p1732_p11 }
  0x18   : > { %p1498_p10 = por %p1497_p7, %p1496_p5 }
  0x19   : > { %p1491_p0 = pnand %p1489_p13, %p1479_p12 }
  0x1b   : > { %p1492_p3 = pneg %p1491_p0 }
  0x1d   : > { %p1499_p2 = pnand %p1498_p10, %p1492_p3 }
  0x1f   : > { %1502 = shalt.err (!%p1499_p2)
}
  0x20   : > { %s1634_s14 = smov 64   ;;  %s1635_s15 = smov 4  }
  0x21   : > { %1373 = dma.hbm_to_vmem [thread:$0]  (!%p1732_p11), %s1966_s2, 1024, %s206_s8, [#allocation8], %s1634_s14, %s1634_s14, %s1635_s15  }
  0x22   : > { %p31_p9 = scmp.eq.s32.totalorder %s30_s12, 0  ;;  %p40_p12 = scmp.ne.s32.totalorder %s1627_s25, %s1623_s24 }
  0x23   : > { %p41_p10 = scmp.eq.s32.totalorder %s1631_s26, 0  ;;  %p1386_p2 = scmp.lt.s32.totalorder %s1631_s26, 2 }
  0x24   : > { %s1754_s18 = scalar_select %p31_p9, %s1627_s25, %s33_s11  }
  0x25   : > { %p42_p13 = por %p41_p10, %p40_p12  ;;  %p1979_p0 = scmp.eq.s32.totalorder %s1704_s5, 1 }
  0x26   : > { %s1763_s20 = sand.u32 1, %s1627_s25   ;;  %s1239_s21 = sshll.u32 %s1631_s26, 7 }
  0x27   : > { %p1758_p3 = por %p1979_p0, %p40_p12  ;;  %s1238_s22 = sshll.u32 %s1763_s20, 3 }
  0x28   : > { %s1770_s8 = scalar_lea.hbm %s1964_s0, %s1239_s21  ;;  %s232_s9 = scalar_lea.vmem [#allocation4], %s1238_s22 }
  0x29   : > { %s1980_s19 = scalar_select %p1758_p3, 1, 0 }
  0x2a   : > { %s239_s11 = sshll.u32 %s232_s9, 4  ;;  %p1772_p11 = pnand %p1386_p2, %p42_p13  ;;  %s240_s11 = int_to_ptr.vmem [resolvable:$true] %s239_s11 }
  0x2b   : > { %s1240_s13 = sshll.u32 %s1763_s20, 4  ;;  %s229_s14 = scalar_lea.sflag [#allocation5], %s1763_s20 }
  0x2c   : > { %s1503_s15 = scalar_lea.hbm %s1770_s8, 128  ;;  %p1505_p7 = pneg %p1772_p11 }
  0x2d   : > { %p1504_p5 = scmp.ne.s32.totalorder %s1770_s8, %s1503_s15  ;;  %s1508_s21 = scalar_lea.hbm %s1964_s0, 256 }
  0x2e   : > { %p1509_p10 = scmp.lt.s32.totalorder %s1770_s8, %s1964_s0  ;;  %p1510_p2 = scmp.lt.s32.totalorder %s1508_s21, %s1503_s15 }
  0x2f   : > { %p1506_p9 = pnand %p1505_p7, %p1504_p5 }
  0x30   : > { %p1511_p13 = por %p1510_p2, %p1509_p10 }
  0x31   : > { %p1507_p12 = pneg %p1506_p9 }
  0x33   : > { %p1512_p0 = pnand %p1511_p13, %p1507_p12 }
  0x35   : > { %1515 = shalt.err (!%p1512_p0)
}
  0x36   : > { %s1516_s20 = scalar_lea.vmem %s240_s11, 128  ;;  %s1636_s7 = smov [#allocation4]  }
  0x37   : > { %p1517_p1 = scmp.ne.s32.totalorder %s240_s11, %s1516_s20  ;;  %s1521_s9 = sshll.u32 %s1636_s7, 4  ;;  %s1522_s9 = int_to_ptr.vmem [resolvable:$false] %s1521_s9 }
  0x38   : > { %s1523_s16 = scalar_lea.vmem %s1522_s9, 256  ;;  %p1524_p9 = scmp.lt.s32.totalorder %s240_s11, %s1522_s9 }
  0x39   : > { %p1519_p6 = pnand %p1517_p1, %p1505_p7  ;;  %p1525_p3 = scmp.lt.s32.totalorder %s1523_s16, %s1516_s20 }
  0x3b   : > { %p1520_p5 = pneg %p1519_p6  ;;  %p1526_p4 = por %p1525_p3, %p1524_p9 }
  0x3d   : > { %p1527_p8 = pnand %p1526_p4, %p1520_p5 }
  0x3f   : > { %1530 = shalt.err (!%p1527_p8)
}
  0x40   : > { %1377 = dma.hbm_to_vmem [thread:$0]  (!%p1772_p11), %s1770_s8, 128, %s240_s11, %s229_s14  }
  0x41   : > { %s250_s15 = scalar_lea.vmem [#allocation7], %s1240_s13  ;;  %s246_s21 = sand.u32 1, %s1631_s26  }
  0x42   : > { %s257_s17 = sshll.u32 %s250_s15, 4  ;;  %s1286_s22 = sshll.u32 %s1631_s26, 8  ;;  %s1799_s17 = int_to_ptr.vmem [resolvable:$true] %s257_s17 }
  0x43   : > { %s1805_s20 = scalar_lea.hbm %s1965_s1, %s1286_s22  ;;  %s1807_s9 = scalar_lea.sflag [#allocation8], %s246_s21 }
  0x44   : > { %s1531_s16 = scalar_lea.hbm %s1805_s20, 256  ;;  %s1536_s13 = scalar_lea.hbm %s1965_s1, 512 }
  0x45   : > { %p1532_p1 = scmp.ne.s32.totalorder %s1805_s20, %s1531_s16  ;;  %p1537_p8 = scmp.lt.s32.totalorder %s1805_s20, %s1965_s1 }
  0x46   : > { %p1538_p3 = scmp.lt.s32.totalorder %s1536_s13, %s1531_s16 }
  0x47   : > { %p1534_p4 = pnand %p1532_p1, %p1505_p7 }
  0x48   : > { %p1539_p12 = por %p1538_p3, %p1537_p8 }
  0x49   : > { %p1535_p6 = pneg %p1534_p4 }
  0x4b   : > { %p1540_p10 = pnand %p1539_p12, %p1535_p6 }
  0x4d   : > { %1543 = shalt.err (!%p1540_p10)
}
  0x4e   : > { %s1544_s21 = scalar_lea.vmem %s1799_s17, 256  ;;  %s1637_s22 = smov [#allocation7]  }
  0x4f   : > { %p1545_p2 = scmp.ne.s32.totalorder %s1799_s17, %s1544_s21  ;;  %s1549_s27 = sshll.u32 %s1637_s22, 4  ;;  %s1550_s27 = int_to_ptr.vmem [resolvable:$false] %s1549_s27 }
  0x50   : > { %s1551_s7 = scalar_lea.vmem %s1550_s27, 512  ;;  %p1552_p5 = scmp.lt.s32.totalorder %s1799_s17, %s1550_s27 }
  0x51   : > { %p1547_p13 = pnand %p1545_p2, %p1505_p7  ;;  %p1553_p9 = scmp.lt.s32.totalorder %s1551_s7, %s1544_s21 }
  0x53   : > { %p1548_p0 = pneg %p1547_p13  ;;  %p1554_p1 = por %p1553_p9, %p1552_p5 }
  0x55   : > { %p1555_p4 = pnand %p1554_p1, %p1548_p0 }
  0x57   : > { %1558 = shalt.err (!%p1555_p4)
}
  0x58   : > { %s1638_s16 = smov 128   ;;  %s1639_s8 = smov 8  }
  0x59   : > { %1380 = dma.hbm_to_vmem [thread:$0]  (!%p1772_p11), %s1805_s20, 256, %s1799_s17, %s1807_s9, %s1638_s16, %s1638_s16, %s1639_s8  }
  0x5a   : > { %p1982_p7 = scmp.ne.s32.totalorder %s1977_s30, 0 }
  0x5b   : > { %s1835_s11 = sand.u32 (!%p1982_p7), 1, %s1623_s24   ;;  %p1983_p6 = scmp.ne.s32.totalorder (!%p1982_p7), %s1975_s28, 0 }
  0x5c   : > { %269 = sbr.rel (%p1982_p7) target bundleno = 1355 (0x54b), region = 44  ;;  %s1244_s13 = sshll.u32 (!%p1982_p7), %s1835_s11, 3 }
  0x5d   : > { %s272_s14 = scalar_lea.sflag (!%p1982_p7), [#allocation5], %s1835_s11  ;;  %s275_s15 = scalar_lea.vmem (!%p1982_p7), [#allocation4], %s1244_s13 }
  0x61   : > { %1602 = dma.done.wait (%p1983_p6), %s272_s14, 128  }
  0x62   : > { %1604 = vsyncadd (%p1983_p6), %s272_s14, 4294967168  ;;  %s280_s30 = sand.u32 1, %s1704_s5   ;;  %s1245_s12 = sshll.u32 %s1835_s11, 4 }
  0x63   : > { %s281_s17 = scalar_lea.sflag [#allocation8], %s280_s30  ;;  %s1847_s20 = scalar_lea.vmem [#allocation7], %s1245_s12 }
  0x64   : > { %1606 = dma.done.wait (%p1983_p6), %s281_s17, 256  }
  0x65   : > { %1608 = vsyncadd (%p1983_p6), %s281_s17, 4294967040  ;;  %p1984_p11 = scmp.eq.s32.totalorder %s1704_s5, 0 }
  0x67   : > { %1610 = dma.done.wait (%p1984_p11), [#allocation8], 1024   ;;  %p1985_p8 = pmov %p1984_p11 }
  0x68   : > { %v357_v0 = vlaneseq  ;;  %v1640_v1 = vmov 1966171168   ;;  %v1430_v6 = vld [vmem:[#allocation9 + $0x8] sm:$0xff]   ;;  %v1431_v7 = vld [vmem:[#allocation9] sm:$0xff]   ;;  %v351_v8 = vld [vmem:[%s275_s15] sm:$0xff]  ;;  %vm480_vm0 = vcmask 261120  }
  0x69   : > { %1612 = vsyncadd (%p1985_p8), [#allocation8], 4294966272  ;;  %v355_v2 = vunpack.c.l.s4 %v1640_v1  ;;  %1312 = vmatprep.subr.bf16.mxu0 %v1430_v6  ;;  %v353_v11 = vcombine.high %v351_v8, %v351_v8  ;;  %v1433_v51 = vld [vmem:[#allocation9 + $0x18] sm:$0xff]   ;;  %v1434_v52 = vld [vmem:[#allocation9 + $0x10] sm:$0xff]   ;;  %s324_s15 = sld [smem:[#allocation3]]  ;;  %vm1048_vm1 = vcmask 1041409  }
  0x6a   : > { %v1858_v3 = vshrl.u32 %v357_v0, 7  ;;  %1313 = vmatpush3.bf16.msra.mxu0 %v1430_v6  ;;  %1324 = vmatprep.subr.bf16.mxu1 %v1433_v51  ;;  %v1435_v53 = vld [vmem:[#allocation9 + $0x28] sm:$0xff]   ;;  %vm1050_vm2 = vcmask 1042434   ;;  %vm1052_vm3 = vcmask 1043459   ;;  %vm1054_vm4 = vcmask 1044484   ;;  %s1287_s30 = sshll.u32 %s1704_s5, 8 }
  0x6b   : > { %v356_v4 = vunpack.c.0.s8 %v355_v2  ;;  %1314 = vmatprep.subr.bf16.mxu0 %v1431_v7  ;;  %1325 = vmatpush3.bf16.msra.mxu1 %v1433_v51  ;;  %v1251_v55 = vld [vmem:[%s1967_s3] ss:$0 sm:$0xff]  ;;  %vm1056_vm5 = vcmask 1045509   ;;  %vm1058_vm7 = vcmask 1046534   ;;  %vm1060_vm8 = vcmask 1047559   ;;  %s321_s17 = scalar_lea.vmem [#allocation10], %s1245_s12  ;;  %s1917_s21 = scalar_lea.hbm %s1970_s6, %s1287_s30 }
  0x6c   : > { %v404_v9 = vsub.s32 0, %v1858_v3  ;;  %1326 = vmatprep.subr.bf16.mxu1 %v1434_v52  ;;  %vm1063_vm9 = vcmask 64512   ;;  %s1116_s5 = scalar_lea.sflag [#allocation6], %s1835_s11  ;;  %p1986_p12 = scmp.ne.s32.totalorder %s1980_s19, 0 }
  0x6d   : > { %v359_v5 = vsub.s32 %v356_v4, %v1858_v3  ;;  %s1642_s22 = smov [#allocation10]  }
  0x6e   : > { %1315 = vmatpush3.bf16.msra.mxu0 %v1431_v7  ;;  %s1563_s27 = sshll.u32 %s1642_s22, 4  ;;  %s1564_s27 = int_to_ptr.vmem [resolvable:$false] %s1563_s27 }
  0x6f   : > { %v360_v10 = vrot.slane %v351_v8, %v359_v5  ;;  %v367_v14 = vrot.slane %v353_v11, %v359_v5  ;;  %1327 = vmatpush3.bf16.msra.mxu1 %v1434_v52  ;;  %1336 = vmatprep.subr.bf16.mxu0 %v1435_v53  ;;  %s1565_s7 = scalar_lea.vmem %s1564_s27, 512 }
  0x71   : > { %v368_v12 = vcombine.high %v360_v10, %v360_v10  ;;  %v376_v13 = vrot.slane %v360_v10, %v359_v5  ;;  %v369_v18 = vcombine.high %v367_v14, %v367_v14  ;;  %v383_v19 = vrot.slane %v367_v14, %v359_v5 }
  0x73   : > { %v390_v15 = vrot.slane %v368_v12, %v359_v5  ;;  %v398_v16 = vcombine.high %v376_v13, %v376_v13  ;;  %v405_v17 = vrot.slane %v376_v13, %v404_v9  ;;  %v397_v24 = vrot.slane %v369_v18, %v359_v5 }
  0x74   : > { %v421_v25 = vrot.slane %v383_v19, %v404_v9  ;;  %v399_v26 = vcombine.high %v383_v19, %v383_v19 }
  0x75   : > { %v400_v20 = vcombine.high %v390_v15, %v390_v15  ;;  %v409_v21 = vrot.slane %v390_v15, %v404_v9  ;;  %v442_v22 = vsub.f32 %v405_v17, %v351_v8  ;;  %v413_v23 = vrot.slane %v398_v16, %v404_v9 }
  0x76   : > { %v425_v31 = vrot.slane %v397_v24, %v404_v9  ;;  %v446_v32 = vsub.f32 %v421_v25, %v351_v8  ;;  %v401_v33 = vcombine.high %v397_v24, %v397_v24  ;;  %v429_v34 = vrot.slane %v399_v26, %v404_v9 }
  0x77   : > { %v443_v27 = vsub.f32 %v409_v21, %v351_v8  ;;  %v450_v28 = vand.u32 2147483647, %v442_v22  ;;  %v417_v29 = vrot.slane %v400_v20, %v404_v9  ;;  %v444_v30 = vsub.f32 %v413_v23, %v351_v8 }
  0x78   : > { %v447_v38 = vsub.f32 %v425_v31, %v351_v8  ;;  %v454_v39 = vand.u32 2147483647, %v446_v32  ;;  %v433_v40 = vrot.slane %v401_v33, %v404_v9  ;;  %v448_v43 = vsub.f32 %v429_v34, %v351_v8  ;;  %v1258_v32 = vld [vmem:[%s1967_s3 + $0x1] ss:$0 sm:$0xff] }
  0x79   : > { %v451_v35 = vand.u32 2147483647, %v443_v27  ;;  %v445_v36 = vsub.f32 %v417_v29, %v351_v8  ;;  %v452_v37 = vand.u32 2147483647, %v444_v30  ;;  %v1436_v29 = vld [vmem:[#allocation9 + $0x20] sm:$0xff]   ;;  %v1437_v30 = vld [vmem:[#allocation9 + $0x38] sm:$0xff]  }
  0x7a   : > { %v455_v44 = vand.u32 2147483647, %v447_v38  ;;  %v449_v45 = vsub.f32 %v433_v40, %v351_v8  ;;  %v456_v48 = vand.u32 2147483647, %v448_v43  ;;  %1348 = vmatprep.subr.bf16.mxu1 %v1437_v30 }
  0x7b   : > { %v458_v41 = vpack.c.bf16 %v451_v35, %v450_v28  ;;  %v453_v42 = vand.u32 2147483647, %v445_v36 }
  0x7c   : > { %v460_v47 = vpack.c.bf16 %v455_v44, %v454_v39  ;;  %v457_v49 = vand.u32 2147483647, %v449_v45 }
  0x7d   : > { %1316 = vmatprep.mubr.msk.bf16.mxu0 %vm480_vm0, %v458_v41  ;;  %v459_v46 = vpack.c.bf16 %v453_v42, %v452_v37 }
  0x7e   : > { %v461_v50 = vpack.c.bf16 %v457_v49, %v456_v48 }
  0x7f   : > { %1317 = vmatmul.mubr.msk.bf16.vlgmr.msra.gmra.mxu0 %vm480_vm0, %v459_v46 }
  0x80   : > { %1320 = vmatprep.mubr.msk.bf16.mxu0 %vm480_vm0, %v460_v47  ;;  %1337 = vmatpush3.bf16.msra.mxu0 %v1435_v53 }
  0x81   : > { %1338 = vmatprep.subr.bf16.mxu0 %v1436_v29 }
  0x84   : > { %1339 = vmatpush3.bf16.msra.mxu0 %v1436_v29 }
  0x87   : > { %1321 = vmatmul.mubr.msk.bf16.gmra.mxu0 %vm480_vm0, %v461_v50 }
 0x13f   : > { %v1318_v54 = vpop.f32.mrf.mxu0 }
 0x140   : > { %v536_v58 = vadd.f32 %v1318_v54, %v1251_v55 }
 0x141   : > { %v527_v56 = vpop.f32.mrf.mxu0 }
 0x142   : > { %v528_v57 = vadd.f32 %v1251_v55, %v527_v56  ;;  %v560_v2 = vmul.f32 0.01, %v536_v58 }
 0x143   : > { %v1319_v59 = vpop.f32.mrf.mxu0 }
 0x144   : > { %v539_v60 = vadd.f32 %v1319_v59, %v1251_v55  ;;  %v558_v62 = vmul.f32 0.01, %v528_v57  ;;  %v568_v11 = vmax.f32 %v536_v58, %v560_v2 }
 0x145   : > { %v530_v61 = vpop.f32.mrf.mxu0 }
 0x146   : > { %v561_v63 = vmul.f32 0.01, %v539_v60  ;;  %v531_v1 = vadd.f32 %v1251_v55, %v530_v61  ;;  %v566_v8 = vmax.f32 %v528_v57, %v558_v62 }
 0x147   : > { %v1322_v4 = vpop.f32.mrf.mxu0 }
 0x148   : > { %v559_v5 = vmul.f32 0.01, %v531_v1  ;;  %v569_v6 = vmax.f32 %v539_v60, %v561_v63  ;;  %v552_v12 = vadd.f32 %v1322_v4, %v1251_v55 }
 0x149   : > { %v543_v7 = vpop.f32.mrf.mxu0 }
 0x14a   : > { %v567_v9 = vmax.f32 %v531_v1, %v559_v5  ;;  %v544_v10 = vadd.f32 %v1251_v55, %v543_v7  ;;  %v575_v16 = vpack.c.bf16 %v569_v6, %v568_v11  ;;  %v564_v21 = vmul.f32 0.01, %v552_v12  ;;  %v1438_v6 = vld [vmem:[#allocation9 + $0x30] sm:$0xff]  }
 0x14b   : > { %v1323_v13 = vpop.f32.mrf.mxu0 }
 0x14c   : > { %v555_v14 = vadd.f32 %v1323_v13, %v1251_v55  ;;  %v574_v15 = vpack.c.bf16 %v567_v9, %v566_v8  ;;  %v562_v18 = vmul.f32 0.01, %v544_v10  ;;  %v572_v26 = vmax.f32 %v552_v12, %v564_v21  ;;  %v1265_v8 = vld [vmem:[%s1967_s3 + $0x2] ss:$0 sm:$0xff] }
 0x14d   : > { %v546_v17 = vpop.f32.mrf.mxu0 }
 0x14e   : > { %v565_v19 = vmul.f32 0.01, %v555_v14  ;;  %v547_v20 = vadd.f32 %v1251_v55, %v546_v17  ;;  %1328 = vmatprep.mubr.msk.bf16.mxu1 %vm480_vm0, %v574_v15  ;;  %v570_v24 = vmax.f32 %v544_v10, %v562_v18 }
 0x14f   : > { %1329 = vmatmul.mubr.msk.bf16.vlgmr.msra.gmra.mxu1 %vm480_vm0, %v575_v16 }
 0x150   : > { %v563_v22 = vmul.f32 0.01, %v547_v20  ;;  %v573_v23 = vmax.f32 %v555_v14, %v565_v19  ;;  %1349 = vmatpush3.bf16.msra.mxu1 %v1437_v30 }
 0x151   : > { %1350 = vmatprep.subr.bf16.mxu1 %v1438_v6 }
 0x152   : > { %v571_v25 = vmax.f32 %v547_v20, %v563_v22  ;;  %v577_v28 = vpack.c.bf16 %v573_v23, %v572_v26 }
 0x154   : > { %v576_v27 = vpack.c.bf16 %v571_v25, %v570_v24  ;;  %1351 = vmatpush3.bf16.msra.mxu1 %v1438_v6 }
 0x156   : > { %1332 = vmatprep.mubr.msk.bf16.mxu1 %vm480_vm0, %v576_v27 }
 0x157   : > { %1333 = vmatmul.mubr.msk.bf16.gmra.mxu1 %vm480_vm0, %v577_v28 }
 0x20f   : > { %v1330_v31 = vpop.f32.mrf.mxu1 }
 0x210   : > { %v651_v35 = vadd.f32 %v1330_v31, %v1258_v32 }
 0x211   : > { %v642_v33 = vpop.f32.mrf.mxu1 }
 0x212   : > { %v643_v34 = vadd.f32 %v1258_v32, %v642_v33  ;;  %v675_v42 = vmul.f32 0.01, %v651_v35 }
 0x213   : > { %v1331_v36 = vpop.f32.mrf.mxu1 }
 0x214   : > { %v654_v37 = vadd.f32 %v1331_v36, %v1258_v32  ;;  %v673_v39 = vmul.f32 0.01, %v643_v34  ;;  %v683_v50 = vmax.f32 %v651_v35, %v675_v42 }
 0x215   : > { %v645_v38 = vpop.f32.mrf.mxu1 }
 0x216   : > { %v676_v40 = vmul.f32 0.01, %v654_v37  ;;  %v646_v41 = vadd.f32 %v1258_v32, %v645_v38  ;;  %v681_v47 = vmax.f32 %v643_v34, %v673_v39 }
 0x217   : > { %v1334_v43 = vpop.f32.mrf.mxu1 }
 0x218   : > { %v674_v44 = vmul.f32 0.01, %v646_v41  ;;  %v684_v45 = vmax.f32 %v654_v37, %v676_v40  ;;  %v667_v51 = vadd.f32 %v1334_v43, %v1258_v32 }
 0x219   : > { %v658_v46 = vpop.f32.mrf.mxu1 }
 0x21a   : > { %v682_v48 = vmax.f32 %v646_v41, %v674_v44  ;;  %v659_v49 = vadd.f32 %v1258_v32, %v658_v46  ;;  %v690_v55 = vpack.c.bf16 %v684_v45, %v683_v50  ;;  %v679_v60 = vmul.f32 0.01, %v667_v51  ;;  %v1272_v44 = vld [vmem:[%s1967_s3 + $0x3] ss:$0 sm:$0xff] }
 0x21b   : > { %v1335_v52 = vpop.f32.mrf.mxu1 }
 0x21c   : > { %v689_v53 = vpack.c.bf16 %v682_v48, %v681_v47  ;;  %v670_v54 = vadd.f32 %v1335_v52, %v1258_v32  ;;  %v677_v57 = vmul.f32 0.01, %v659_v49  ;;  %v687_v2 = vmax.f32 %v667_v51, %v679_v60  ;;  %v1279_v51 = vld [vmem:[%s1968_s4] ss:$0 sm:$0xff] }
 0x21d   : > { %v661_v56 = vpop.f32.mrf.mxu1 }
 0x21e   : > { %v680_v58 = vmul.f32 0.01, %v670_v54  ;;  %v662_v59 = vadd.f32 %v1258_v32, %v661_v56  ;;  %1340 = vmatprep.mubr.msk.bf16.mxu0 %vm480_vm0, %v689_v53  ;;  %v685_v63 = vmax.f32 %v659_v49, %v677_v57 }
 0x21f   : > { %1341 = vmatmul.mubr.msk.bf16.vlgmr.msra.gmra.mxu0 %vm480_vm0, %v690_v55 }
 0x220   : > { %v678_v61 = vmul.f32 0.01, %v662_v59  ;;  %v688_v62 = vmax.f32 %v670_v54, %v680_v58 }
 0x222   : > { %v686_v1 = vmax.f32 %v662_v59, %v678_v61  ;;  %v692_v5 = vpack.c.bf16 %v688_v62, %v687_v2 }
 0x224   : > { %v691_v4 = vpack.c.bf16 %v686_v1, %v685_v63 }
 0x226   : > { %1344 = vmatprep.mubr.msk.bf16.mxu0 %vm480_vm0, %v691_v4 }
 0x227   : > { %1345 = vmatmul.mubr.msk.bf16.gmra.mxu0 %vm480_vm0, %v692_v5 }
 0x2df   : > { %v1342_v7 = vpop.f32.mrf.mxu0 }
 0x2e0   : > { %v766_v11 = vadd.f32 %v1342_v7, %v1265_v8 }
 0x2e1   : > { %v757_v9 = vpop.f32.mrf.mxu0 }
 0x2e2   : > { %v758_v10 = vadd.f32 %v1265_v8, %v757_v9  ;;  %v790_v18 = vmul.f32 0.01, %v766_v11 }
 0x2e3   : > { %v1343_v12 = vpop.f32.mrf.mxu0 }
 0x2e4   : > { %v769_v13 = vadd.f32 %v1343_v12, %v1265_v8  ;;  %v788_v15 = vmul.f32 0.01, %v758_v10  ;;  %v798_v26 = vmax.f32 %v766_v11, %v790_v18 }
 0x2e5   : > { %v760_v14 = vpop.f32.mrf.mxu0 }
 0x2e6   : > { %v791_v16 = vmul.f32 0.01, %v769_v13  ;;  %v761_v17 = vadd.f32 %v1265_v8, %v760_v14  ;;  %v796_v23 = vmax.f32 %v758_v10, %v788_v15 }
 0x2e7   : > { %v1346_v19 = vpop.f32.mrf.mxu0 }
 0x2e8   : > { %v789_v20 = vmul.f32 0.01, %v761_v17  ;;  %v799_v21 = vmax.f32 %v769_v13, %v791_v16  ;;  %v782_v27 = vadd.f32 %v1346_v19, %v1265_v8 }
 0x2e9   : > { %v773_v22 = vpop.f32.mrf.mxu0 }
 0x2ea   : > { %v797_v24 = vmax.f32 %v761_v17, %v789_v20  ;;  %v774_v25 = vadd.f32 %v1265_v8, %v773_v22  ;;  %v805_v31 = vpack.c.bf16 %v799_v21, %v798_v26  ;;  %v794_v36 = vmul.f32 0.01, %v782_v27 }
 0x2eb   : > { %v1347_v28 = vpop.f32.mrf.mxu0 }
 0x2ec   : > { %v804_v29 = vpack.c.bf16 %v797_v24, %v796_v23  ;;  %v785_v30 = vadd.f32 %v1347_v28, %v1265_v8  ;;  %v792_v33 = vmul.f32 0.01, %v774_v25  ;;  %v802_v41 = vmax.f32 %v782_v27, %v794_v36 }
 0x2ed   : > { %v776_v32 = vpop.f32.mrf.mxu0 }
 0x2ee   : > { %v795_v34 = vmul.f32 0.01, %v785_v30  ;;  %v777_v35 = vadd.f32 %v1265_v8, %v776_v32  ;;  %1352 = vmatprep.mubr.msk.bf16.mxu1 %vm480_vm0, %v804_v29  ;;  %v800_v39 = vmax.f32 %v774_v25, %v792_v33  ;;  %v957_v32 = vstv %s324_s15 }
 0x2ef   : > { %1353 = vmatmul.mubr.msk.bf16.vlgmr.msra.gmra.mxu1 %vm480_vm0, %v805_v31 }
 0x2f0   : > { %v793_v37 = vmul.f32 0.01, %v777_v35  ;;  %v803_v38 = vmax.f32 %v785_v30, %v795_v34 }
 0x2f2   : > { %v801_v40 = vmax.f32 %v777_v35, %v793_v37  ;;  %v807_v43 = vpack.c.bf16 %v803_v38, %v802_v41 }
 0x2f4   : > { %v806_v42 = vpack.c.bf16 %v801_v40, %v800_v39 }
 0x2f6   : > { %1356 = vmatprep.mubr.msk.bf16.mxu1 %vm480_vm0, %v806_v42 }
 0x2f7   : > { %1357 = vmatmul.mubr.msk.bf16.gmra.mxu1 %vm480_vm0, %v807_v43 }
 0x3af   : > { %v1354_v45 = vpop.f32.mrf.mxu1 }
 0x3b0   : > { %v881_v46 = vadd.f32 %v1354_v45, %v1272_v44 }
 0x3b1   : > { %v872_v47 = vpop.f32.mrf.mxu1 }
 0x3b2   : > { %v905_v48 = vmul.f32 0.01, %v881_v46  ;;  %v873_v49 = vadd.f32 %v1272_v44, %v872_v47 }
 0x3b3   : > { %v1355_v50 = vpop.f32.mrf.mxu1 }
 0x3b4   : > { %v913_v52 = vmax.f32 %v881_v46, %v905_v48  ;;  %v903_v53 = vmul.f32 0.01, %v873_v49  ;;  %v884_v54 = vadd.f32 %v1355_v50, %v1272_v44 }
 0x3b5   : > { %v875_v55 = vpop.f32.mrf.mxu1 }
 0x3b6   : > { %v911_v56 = vmax.f32 %v873_v49, %v903_v53  ;;  %v906_v57 = vmul.f32 0.01, %v884_v54  ;;  %v876_v58 = vadd.f32 %v1272_v44, %v875_v55  ;;  %v927_v59 = vmul.f32 %v1279_v51, %v913_v52 }
 0x3b7   : > { %v1358_v60 = vpop.f32.mrf.mxu1 }
 0x3b8   : > { %v914_v61 = vmax.f32 %v884_v54, %v906_v57  ;;  %v904_v62 = vmul.f32 0.01, %v876_v58  ;;  %v897_v63 = vadd.f32 %v1358_v60, %v1272_v44  ;;  %v939_v1 = vsel %vm480_vm0, %v927_v59, 0.0 }
 0x3b9   : > { %v888_v2 = vpop.f32.mrf.mxu1  ;;  %940 = vadd.xlane.f32.xlu1 %v939_v1  ;;  %v925_v4 = vmul.f32 %v1279_v51, %v911_v56 }
 0x3ba   : > { %v912_v5 = vmax.f32 %v876_v58, %v904_v62  ;;  %v889_v6 = vadd.f32 %v1272_v44, %v888_v2  ;;  %v928_v7 = vmul.f32 %v1279_v51, %v914_v61  ;;  %v909_v8 = vmul.f32 0.01, %v897_v63 }
 0x3bb   : > { %v1359_v9 = vpop.f32.mrf.mxu1  ;;  %v933_v10 = vsel %vm480_vm0, %v925_v4, 0.0 }
 0x3bc   : > { %v907_v11 = vmul.f32 0.01, %v889_v6  ;;  %v900_v12 = vadd.f32 %v1359_v9, %v1272_v44  ;;  %934 = vadd.xlane.f32.xlu0 %v933_v10  ;;  %v942_v13 = vsel %vm480_vm0, %v928_v7, 0.0  ;;  %v926_v15 = vmul.f32 %v1279_v51, %v912_v5 }
 0x3bd   : > { %v891_v14 = vpop.f32.mrf.mxu1  ;;  %943 = vadd.xlane.f32.xlu1 %v942_v13  ;;  %v917_v19 = vmax.f32 %v897_v63, %v909_v8 }
 0x3be   : > { %v915_v16 = vmax.f32 %v889_v6, %v907_v11  ;;  %v910_v17 = vmul.f32 0.01, %v900_v12  ;;  %v892_v18 = vadd.f32 %v1272_v44, %v891_v14  ;;  %v936_v20 = vsel %vm480_vm0, %v926_v15, 0.0 }
 0x3bf   : > { %v931_v26 = vmul.f32 %v1279_v51, %v917_v19 }
 0x3c0   : > { %v908_v21 = vmul.f32 0.01, %v892_v18  ;;  %937 = vadd.xlane.f32.xlu0 %v936_v20  ;;  %v929_v22 = vmul.f32 %v1279_v51, %v915_v16  ;;  %v918_v23 = vmax.f32 %v900_v12, %v910_v17  ;;  %v1015_v17 = vand.u32 127, %v357_v0 }
 0x3c1   : > { %v951_v30 = vsel %vm480_vm0, %v931_v26, 0.0 }
 0x3c2   : > { %v916_v24 = vmax.f32 %v892_v18, %v908_v21  ;;  %v945_v25 = vsel %vm480_vm0, %v929_v22, 0.0  ;;  %v932_v29 = vmul.f32 %v1279_v51, %v918_v23  ;;  %v1018_v21 = vsub.s32 %v1015_v17, %v1858_v3 }
 0x3c3   : > { %vm1070_vm6 = vcmp.eq.s32.totalorder %v1858_v3, %v1015_v17 }
 0x3c4   : > { %946 = vadd.xlane.f32.xlu0 %v945_v25  ;;  %v930_v27 = vmul.f32 %v1279_v51, %v916_v24  ;;  %v954_v31 = vsel %vm480_vm0, %v932_v29, 0.0 }
 0x3c6   : > { %v948_v28 = vsel %vm480_vm0, %v930_v27, 0.0 }
 0x3c7   : > { %949 = vadd.xlane.f32.xlu1 %v948_v28 }
 0x3c8   : > { %952 = vadd.xlane.f32.xlu0 %v951_v30 }
 0x3cb   : > { %955 = vadd.xlane.f32.xlu1 %v954_v31 }
 0x442   : > { %v941_v33 = vpop.xlane.xlu1 %940 }
 0x443   : > { %v960_v34 = vadd.f32 %v957_v32, %v941_v33 }
 0x445   : > { %v968_v35 = vsub.f32 0.0, %v960_v34  ;;  %v935_v36 = vpop.xlane.xlu0 %934 }
 0x446   : > { %v958_v37 = vadd.f32 %v957_v32, %v935_v36  ;;  %v944_v38 = vpop.xlane.xlu1 %943 }
 0x447   : > { %v978_v39 = vmul.f32 1.442695, %v968_v35  ;;  %v961_v40 = vadd.f32 %v957_v32, %v944_v38 }
 0x448   : > { %v966_v41 = vsub.f32 0.0, %v958_v37 }
 0x449   : > { %v969_v42 = vsub.f32 0.0, %v961_v40  ;;  %v938_v43 = vpop.xlane.xlu0 %937  ;;  %1439 = vpow2.f32 %v978_v39 }
 0x44a   : > { %v974_v44 = vmul.f32 1.442695, %v966_v41  ;;  %v959_v45 = vadd.f32 %v957_v32, %v938_v43  ;;  %v1641_v41 = vmov 0.0  }
 0x44b   : > { %v980_v46 = vmul.f32 1.442695, %v969_v42  ;;  %v1280_v42 = vsel %vm1070_vm6, 1.0, %v1641_v41 }
 0x44c   : > { %1441 = vpow2.f32 %v974_v44  ;;  %v967_v47 = vsub.f32 0.0, %v959_v45  ;;  %v1073_v45 = vsub.f32 1.0, %v1280_v42 }
 0x44d   : > { %1443 = vpow2.f32 %v980_v46  ;;  %v947_v48 = vpop.xlane.xlu0 %946  ;;  %v1066_v46 = vld [vmem:[%s1847_s20] sm:$0xff] }
 0x44e   : > { %v976_v49 = vmul.f32 1.442695, %v967_v47  ;;  %v962_v50 = vadd.f32 %v957_v32, %v947_v48  ;;  %v1067_v47 = vld [vmem:[%s1847_s20 + $0x8] sm:$0xff]  ;;  %v1074_v48 = vmul.f32 %v1073_v45, %v1066_v46  ;;  %s1129_s20 = sshll.u32 %s321_s17, 4  ;;  %s1919_s20 = int_to_ptr.vmem [resolvable:$true] %s1129_s20 }
 0x44f   : > { %s1559_s12 = scalar_lea.vmem %s1919_s20, 256  ;;  %p1566_p13 = scmp.lt.s32.totalorder %s1919_s20, %s1564_s27 }
 0x450   : > { %1445 = vpow2.f32 %v976_v49  ;;  %v970_v51 = vsub.f32 0.0, %v962_v50  ;;  %v950_v52 = vpop.xlane.xlu1 %949  ;;  %v1075_v49 = vmul.f32 %v1073_v45, %v1067_v47  ;;  %p1560_p3 = scmp.ne.s32.totalorder %s1919_s20, %s1559_s12  ;;  %p1567_p0 = scmp.lt.s32.totalorder %s1565_s7, %s1559_s12 }
 0x451   : > { %v963_v53 = vadd.f32 %v957_v32, %v950_v52  ;;  %v953_v54 = vpop.xlane.xlu0 %952 }
 0x452   : > { %v982_v55 = vmul.f32 1.442695, %v970_v51  ;;  %v964_v56 = vadd.f32 %v957_v32, %v953_v54  ;;  %p1561_p10 = pnand %p1560_p3, %p1986_p12  ;;  %p1568_p5 = por %p1567_p0, %p1566_p13 }
 0x453   : > { %v971_v57 = vsub.f32 0.0, %v963_v53 }
 0x454   : > { %1447 = vpow2.f32 %v982_v55  ;;  %v972_v58 = vsub.f32 0.0, %v964_v56  ;;  %v956_v59 = vpop.xlane.xlu1 %955  ;;  %p1562_p2 = pneg %p1561_p10 }
 0x455   : > { %v984_v60 = vmul.f32 1.442695, %v971_v57  ;;  %v965_v61 = vadd.f32 %v957_v32, %v956_v59  ;;  %v1076_v57 = vsel %vm1063_vm9, %v1074_v48, 0.0 }
 0x456   : > { %v986_v62 = vmul.f32 1.442695, %v972_v58  ;;  %v1440_v1 = vpop.eup %1439  ;;  %v1079_v58 = vsel %vm1063_vm9, %v1075_v49, 0.0  ;;  %p1569_p9 = pnand %p1568_p5, %p1562_p2 }
 0x457   : > { %1449 = vpow2.f32 %v984_v60  ;;  %v973_v63 = vsub.f32 0.0, %v965_v61  ;;  %v992_v7 = vadd.f32 1.0, %v1440_v1 }
 0x458   : > { %1451 = vpow2.f32 %v986_v62 }
 0x459   : > { %v1442_v2 = vpop.eup %1441  ;;  %v988_v4 = vmul.f32 1.442695, %v973_v63 }
 0x45a   : > { %v1444_v5 = vpop.eup %1443  ;;  %v990_v6 = vadd.f32 1.0, %v1442_v2 }
 0x45b   : > { %1453 = vpow2.f32 %v988_v4  ;;  %v993_v9 = vadd.f32 1.0, %v1444_v5 }
 0x45c   : > { %1455 = vrcp.f32 %v990_v6 }
 0x45d   : > { %v1446_v8 = vpop.eup %1445  ;;  %1457 = vrcp.f32 %v992_v7 }
 0x45e   : > { %v991_v10 = vadd.f32 1.0, %v1446_v8 }
 0x460   : > { %1459 = vrcp.f32 %v991_v10 }
 0x461   : > { %v1448_v11 = vpop.eup %1447  ;;  %1461 = vrcp.f32 %v993_v9 }
 0x462   : > { %v994_v12 = vadd.f32 1.0, %v1448_v11 }
 0x464   : > { %v1450_v13 = vpop.eup %1449  ;;  %1463 = vrcp.f32 %v994_v12 }
 0x465   : > { %v1452_v14 = vpop.eup %1451  ;;  %v995_v15 = vadd.f32 1.0, %v1450_v13 }
 0x466   : > { %v996_v16 = vadd.f32 1.0, %v1452_v14 }
 0x467   : > { %1465 = vrcp.f32 %v995_v15 }
 0x468   : > { %v1454_v18 = vpop.eup %1453  ;;  %1467 = vrcp.f32 %v996_v16 }
 0x469   : > { %v997_v19 = vadd.f32 1.0, %v1454_v18  ;;  %v1456_v20 = vpop.eup %1455 }
 0x46a   : > { %v1458_v22 = vpop.eup %1457  ;;  %v1019_v25 = vrot.slane %v1456_v20, %v1018_v21 }
 0x46b   : > { %1469 = vrcp.f32 %v997_v19  ;;  %v1027_v27 = vrot.slane %v1458_v22, %v1018_v21 }
 0x46d   : > { %v1460_v23 = vpop.eup %1459 }
 0x46e   : > { %v1462_v24 = vpop.eup %1461  ;;  %v1023_v26 = vrot.slane %v1460_v23, %v1018_v21 }
 0x46f   : > { %v1031_v30 = vrot.slane %v1462_v24, %v1018_v21 }
 0x470   : > { %v1049_v28 = vsel %vm1048_vm1, %v1023_v26, %v1019_v25 }
 0x471   : > { %v1464_v29 = vpop.eup %1463  ;;  %v1051_v0 = vsel %vm1050_vm2, %v1027_v27, %v1049_v28 }
 0x472   : > { %v1035_v31 = vrot.slane %v1464_v29, %v1018_v21  ;;  %v1053_v32 = vsel %vm1052_vm3, %v1031_v30, %v1051_v0 }
 0x474   : > { %v1466_v33 = vpop.eup %1465  ;;  %v1055_v37 = vsel %vm1054_vm4, %v1035_v31, %v1053_v32 }
 0x475   : > { %v1468_v34 = vpop.eup %1467  ;;  %v1039_v35 = vrot.slane %v1466_v33, %v1018_v21 }
 0x476   : > { %v1043_v36 = vrot.slane %v1468_v34, %v1018_v21 }
 0x477   : > { %v1057_v38 = vsel %vm1056_vm5, %v1039_v35, %v1055_v37 }
 0x478   : > { %v1470_v39 = vpop.eup %1469  ;;  %v1059_v43 = vsel %vm1058_vm7, %v1043_v36, %v1057_v38 }
 0x479   : > { %v1047_v40 = vrot.slane %v1470_v39, %v1018_v21 }
 0x47b   : > { %v1061_v44 = vsel %vm1060_vm8, %v1047_v40, %v1059_v43 }
 0x47c   : > { %1064 = vst.msk [vmem:[#allocation2] sm:$0xff] %vm1063_vm9, %v1061_v44 }
 0x483   : > { %v1065_v50 = vld [vmem:[#allocation2] sm:$0xff] }
 0x484   : > { %v1085_v51 = vmul.f32 %v1074_v48, %v1065_v50  ;;  %v1082_v3 = vsub.f32 1.0, %v1065_v50 }
 0x486   : > { %v1087_v52 = vand.u32 2147483647, %v1085_v51  ;;  %v1086_v53 = vmul.f32 %v1082_v3, %v1075_v49 }
 0x488   : > { %v1089_v54 = vsel %vm1063_vm9, %v1087_v52, 0.0  ;;  %v1088_v55 = vand.u32 2147483647, %v1086_v53 }
 0x489   : > { %1090 = vadd.xlane.f32.xlu0 %v1089_v54 }
 0x48a   : > { %v1092_v56 = vsel %vm1063_vm9, %v1088_v55, 0.0 }
 0x48b   : > { %1093 = vadd.xlane.f32.xlu1 %v1092_v56 }
 0x48d   : > { %1077 = vadd.xlane.f32.xlu0 %v1076_v57 }
 0x48f   : > { %1080 = vadd.xlane.f32.xlu1 %v1079_v58 }
 0x512   : > { %v1091_v59 = vpop.xlane.xlu0 %1090 }
 0x513   : > { %v1095_v60 = vmax.f32 %v1091_v59, 1e-12 }
 0x514   : > { %v1094_v61 = vpop.xlane.xlu1 %1093 }
 0x515   : > { %1471 = vrcp.f32 %v1095_v60  ;;  %v1096_v62 = vmax.f32 %v1094_v61, 1e-12 }
 0x516   : > { %v1078_v63 = vpop.xlane.xlu0 %1077 }
 0x517   : > { %1473 = vrcp.f32 %v1096_v62 }
 0x518   : > { %v1081_v2 = vpop.xlane.xlu1 %1080 }
 0x522   : > { %v1472_v1 = vpop.eup %1471 }
 0x523   : > { %v1099_v4 = vmul.f32 %v1472_v1, %v1078_v63 }
 0x524   : > { %v1474_v5 = vpop.eup %1473 }
 0x525   : > { %v1101_v6 = vmul.f32 %v1099_v4, %v1085_v51  ;;  %v1100_v7 = vmul.f32 %v1474_v5, %v1081_v2 }
 0x527   : > { %v1105_v8 = vadd.f32 %v1280_v42, %v1101_v6  ;;  %v1102_v9 = vmul.f32 %v1100_v7, %v1086_v53 }
 0x529   : > { %v1107_v10 = vadd.f32 1e-06, %v1105_v8  ;;  %v1108_v11 = vadd.f32 1e-06, %v1102_v9 }
 0x52b   : > { %v1109_v12 = vadd.f32 %v1108_v11, %v1107_v10 }
 0x52d   : > { %1475 = vrcp.f32 %v1109_v12 }
 0x53a   : > { %v1476_v13 = vpop.eup %1475 }
 0x53b   : > { %v1111_v14 = vmul.f32 %v1476_v13, %v1107_v10  ;;  %v1112_v15 = vmul.f32 %v1476_v13, %v1108_v11 }
 0x53d   : > { %1114 = vst.msk [vmem:[%s321_s17 + $0x8] sm:$0xff] %vm1063_vm9, %v1112_v15  ;;  %1113 = vst.msk [vmem:[%s321_s17] sm:$0xff] %vm1063_vm9, %v1111_v14 }
 0x53e   : > { %1572 = shalt.err (!%p1569_p9)
}
 0x53f   : > { %s1573_s16 = scalar_lea.hbm %s1917_s21, 256  ;;  %s1577_s14 = scalar_lea.hbm %s1970_s6, 512 }
 0x540   : > { %p1574_p1 = scmp.ne.s32.totalorder %s1917_s21, %s1573_s16  ;;  %p1578_p6 = scmp.lt.s32.totalorder %s1917_s21, %s1970_s6 }
 0x541   : > { %p1579_p11 = scmp.lt.s32.totalorder %s1577_s14, %s1573_s16 }
 0x542   : > { %p1575_p4 = pnand %p1574_p1, %p1986_p12 }
 0x543   : > { %p1580_p8 = por %p1579_p11, %p1578_p6 }
 0x544   : > { %p1576_p7 = pneg %p1575_p4 }
 0x546   : > { %p1581_p3 = pnand %p1580_p8, %p1576_p7 }
 0x548   : > { %1584 = shalt.err (!%p1581_p3)
}
 0x549   : > { %s1643_s17 = smov 128   ;;  %s1644_s28 = smov 8  }
 0x54a   : > { %1368 = dma.vmem_to_hbm [thread:$0]  (%p1986_p12), %s1919_s20, 256, %s1917_s21, %s1116_s5, %s1643_s17, %s1643_s17, %s1644_s28  }
 0x54b PF: > { %s1144_s9 = sand.u32 1, %s1619_s23   ;;  %p1987_p10 = scmp.ne.s32.totalorder %s1976_s29, 0 }
 0x54c   : > { %p1988_p2 = scmp.ge.s32.totalorder %s1631_s26, 2  ;;  %s1145_s12 = scalar_lea.sflag [#allocation6], %s1144_s9 }
 0x54e   : > { %p1382_p13 = pnand %p1988_p2, %p1987_p10 }
 0x550   : > { %p1383_p0 = pneg %p1382_p13 }
 0x552   : > { %1614 = dma.done.wait (%p1383_p0), %s1145_s12, 256  }
 0x553   : > { %1616 = vsyncadd (%p1383_p0), %s1145_s12, 4294967040  ;;  %p23_p5 = scmp.ge.s32.totalorder %s1737_s10, 4   ;;  %s1989_s23 = smov %s1623_s24 }
 0x554   : > { %s1990_s24 = smov %s1627_s25  ;;  %s1991_s25 = smov %s1754_s18 }
 0x555   : > { %s1992_s26 = smov %s1737_s10  ;;  %25 = sbr.rel (!%p23_p5) target bundleno = 9 (0x9), region = 112 }
 0x55a   :  { %1150 = vsyncpa [#allocation5], 1 }
 0x55b   :  { %1152 = vsyncpa [#allocation5 + $0x1], 1 }
 0x55c   :  { %1153 = vsyncpa [#allocation8], 1 }
 0x55d   :  { %1155 = vsyncpa [#allocation8 + $0x1], 1 }
 0x55e   :  { %1156 = vsyncpa [#allocation6], 1 }
 0x55f   :  { %1158 = vsyncpa [#allocation6 + $0x1], 1 }

</bundles_post_ra>
